<compile_context>
chip_gen: v5e
topology: v5e:2x2
jax: 0.10.0
libtpu: 0.0.40
codegen_flags: <defaults>
</compile_context>

<pallas_src>
import jax
import jax.numpy as jnp
from jax import lax
from jax.experimental import pallas as pl
from jax.experimental.pallas import tpu as pltpu

_LANES = 128
_SUBLANES = 8
_GRAN = _SUBLANES * _LANES        # 1024-element alignment of the kernel region
_CH_ROWS = 32                     # rows per inner-loop step (full packed vreg for int8)
_DEFAULT_BLOCK_ROWS = 8192        # rows per grid step -> 4 MiB f32 per input tile


def _cdiv(a, b):
    return -(-a // b)


def _make_dice_kernel(blk, rows_main, nb, n_blocks, has_phantom):
    """Kernel for a (rows_main, 128) slab, blocks of blk rows, nb blocks per core."""
    last_rows = rows_main - (n_blocks - 1) * blk
    uniform = last_rows == blk

    def kernel(pred_ref, target_ref, out_ref, acc_i_ref, acc_d_ref):
        c = pl.program_id(0)            # core / half index
        i = pl.program_id(1)            # block index within this half
        gid = c * nb + i                # global block id (may exceed n_blocks-1)

        @pl.when(i == 0)
        def _init():
            acc_i_ref[...] = jnp.zeros_like(acc_i_ref)
            acc_d_ref[...] = jnp.zeros_like(acc_d_ref)

        def accumulate(rows):           # rows: static, multiple of 8
            n_big = rows // _CH_ROWS
            rem8 = (rows % _CH_ROWS) // _SUBLANES
            if n_big > 0:
                def body(j, carry):
                    acc_i, acc_d = carry
                    r = pl.multiple_of(j * _CH_ROWS, _CH_ROWS)
                    p = pred_ref[pl.ds(r, _CH_ROWS), :].astype(jnp.float32)
                    t = target_ref[pl.ds(r, _CH_ROWS), :].astype(jnp.float32)
                    return acc_i + p * t, acc_d + (p + t)

                acc_i, acc_d = lax.fori_loop(
                    0, n_big, body,
                    (acc_i_ref[...], acc_d_ref[...]),
                    unroll=min(4, n_big),
                )
                acc_i_ref[...] = acc_i
                acc_d_ref[...] = acc_d
            # Static remainder (< 32 rows, multiple of 8) — at most once, in the
            # last real block.
            for k in range(rem8):
                r = n_big * _CH_ROWS + k * _SUBLANES
                p = pred_ref[pl.ds(r, _SUBLANES), :].astype(jnp.float32)
                t = target_ref[pl.ds(r, _SUBLANES), :].astype(jnp.float32)
                sl = pl.ds(k * _SUBLANES, _SUBLANES)
                acc_i_ref[sl, :] = acc_i_ref[sl, :] + p * t
                acc_d_ref[sl, :] = acc_d_ref[sl, :] + (p + t)

        if uniform and not has_phantom:
            accumulate(blk)
        elif uniform:
            @pl.when(gid < n_blocks)          # skip the phantom (duplicate) block
            def _full():
                accumulate(blk)
        else:
            @pl.when(gid < n_blocks - 1)
            def _full():
                accumulate(blk)

            @pl.when(gid == n_blocks - 1)     # statically shorter loop, no masking
            def _tail():
                accumulate(last_rows)

        @pl.when(i == nb - 1)
        def _finalize():
            out_ref[0, 0] = jnp.sum(acc_i_ref[...])   # intersection
            out_ref[0, 1] = jnp.sum(acc_d_ref[...])   # sum(pred) + sum(target)

    return kernel


def dice_index(pred, target, *, block_rows=_DEFAULT_BLOCK_ROWS, smooth=1.0):
    """Dice index of two arrays of identical shape. Returns an f32 scalar."""
    assert pred.shape == target.shape, "pred/target must have the same shape"

    p_flat = pred.reshape(-1)
    t_flat = target.reshape(-1)
    n = p_flat.shape[0]

    # Keep the block row count sublane-aligned no matter what the caller passes.
    block_rows = max(_SUBLANES, (block_rows // _SUBLANES) * _SUBLANES)

    rows_main = (n // _GRAN) * _SUBLANES        # whole-(8,128)-chunk prefix
    n_main = rows_main * _LANES

    inter = jnp.float32(0.0)
    denom = jnp.float32(0.0)

    if rows_main > 0:
        if n_main == n:
            # Contiguous reshape: free, kernel reads each input exactly once.
            p2d = p_flat.reshape(rows_main, _LANES)
            t2d = t_flat.reshape(rows_main, _LANES)
        else:
            # TODO(synk): this prefix slice can materialize an HBM copy of
            # (almost) the whole input before the custom call; element counts
            # divisible by 1024 hit the copy-free fast path above.
            p2d = p_flat[:n_main].reshape(rows_main, _LANES)
            t2d = t_flat[:n_main].reshape(rows_main, _LANES)

        blk = min(block_rows, rows_main)        # rows_main % 8 == 0 -> blk % 8 == 0
        n_blocks = _cdiv(rows_main, blk)
        n_split = 2 if n_blocks >= 2 else 1     # split row blocks across 2 TCs
        nb = _cdiv(n_blocks, n_split)
        has_phantom = n_split * nb > n_blocks   # odd block count -> one dummy step

        if has_phantom:
            def idx_map(c, i):
                # Clamp the phantom step to a valid block; the kernel skips it.
                return (jnp.minimum(c * nb + i, n_blocks - 1), 0)
        else:
            def idx_map(c, i):
                return (c * nb + i, 0)

        kernel = _make_dice_kernel(blk, rows_main, nb, n_blocks, has_phantom)

        partials = pl.pallas_call(
            kernel,
            out_shape=jax.ShapeDtypeStruct((n_split, 2), jnp.float32),
            grid=(n_split, nb),
            in_specs=[
                pl.BlockSpec((blk, _LANES), idx_map),
                pl.BlockSpec((blk, _LANES), idx_map),
            ],
            out_specs=pl.BlockSpec(
                (1, 2), lambda c, i: (c, 0), memory_space=pltpu.SMEM
            ),
            scratch_shapes=[
                pltpu.VMEM((_CH_ROWS, _LANES), jnp.float32),
                pltpu.VMEM((_CH_ROWS, _LANES), jnp.float32),
            ],
            compiler_params=pltpu.CompilerParams(
                # TODO(synk): on v7x, pltpu.CORE_PARALLEL on the leading axis
                # (or pl.core_map over create_tensorcore_mesh) pins one half of
                # the row blocks to each TensorCore explicitly; "parallel" is
                # the portable form and degrades to a sequential loop on 1-TC
                # parts (v5e/v6e).
                dimension_semantics=("parallel", "arbitrary"),
                vmem_limit_bytes=64 << 20,
            ),
        )(p2d, t2d)

        inter = inter + jnp.sum(partials[:, 0])
        denom = denom + jnp.sum(partials[:, 1])

    if n_main < n:
        # Tiny (< 1024 element) ragged tail: plain-JAX sums, avoids padding copies.
        p_tail = p_flat[n_main:].astype(jnp.float32)
        t_tail = t_flat[n_main:].astype(jnp.float32)
        inter = inter + jnp.sum(p_tail * t_tail)
        denom = denom + jnp.sum(p_tail) + jnp.sum(t_tail)

    return 2.0 * inter / (denom + jnp.float32(smooth))


if __name__ == "__main__":
    key = jax.random.PRNGKey(0)
    k_pred, k_tgt = jax.random.split(key)

    # NCHW inputs: predicted segmentation probabilities and a binary target.
    pred = jax.nn.sigmoid(jax.random.normal(k_pred, (2, 4, 16, 16), jnp.float32))
    target = (jax.random.uniform(k_tgt, (2, 4, 16, 16)) > 0.5).astype(jnp.float32)

    result = jax.block_until_ready(dice_index(pred, target))

    # Pure-JAX reference check.
    smooth = 1.0
    ref = 2.0 * jnp.sum(pred * target) / (jnp.sum(pred) + jnp.sum(target) + smooth)
    assert jnp.allclose(result, ref, rtol=1e-5, atol=1e-6), (result, ref)

    print("KERNEL_OK")
</pallas_src>

<mosaic_0001>
module attributes {stable_mosaic.version = 11 : i64} {
  func.func @kernel(%arg0: i32, %arg1: i32, %arg2: memref<16x128xf32, #tpu.memory_space<vmem>>, %arg3: memref<16x128xf32, #tpu.memory_space<vmem>>, %arg4: memref<1x2xf32, #tpu.memory_space<smem>>, %arg5: memref<32x128xf32, #tpu.memory_space<vmem>>, %arg6: memref<32x128xf32, #tpu.memory_space<vmem>>) attributes {dimension_semantics = [#tpu.dimension_semantics<parallel>, #tpu.dimension_semantics<arbitrary>], iteration_bounds = array<i64: 1, 1>, scalar_prefetch = 0 : i64, scratch_operands = 2 : i64, tpu.core_type = #tpu.core_type<tc>, window_params = [{transform_indices = @transform_0, window_bounds = array<i64: 16, 128>}, {transform_indices = @transform_1, window_bounds = array<i64: 16, 128>}, {transform_indices = @transform_2, window_bounds = array<i64: 1, 2>}]} {
    %c0_i32 = arith.constant 0 : i32
    %0 = arith.cmpi eq, %arg1, %c0_i32 : i32
    %1 = arith.extui %0 : i1 to i32
    %c0_i32_0 = arith.constant 0 : i32
    %2 = arith.cmpi ne, %1, %c0_i32_0 : i32
    scf.if %2 {
      %cst = arith.constant 0.000000e+00 : f32
      %26 = vector.broadcast %cst : f32 to vector<32x128xf32>
      %c0_25 = arith.constant 0 : index
      %c0_26 = arith.constant 0 : index
      %27 = vector.load %arg5[%c0_25, %c0_26] : memref<32x128xf32, #tpu.memory_space<vmem>>, vector<32x128xf32>
      tpu.vector_store %arg5[%c0_25, %c0_26], %26 {strides = array<i32>} : memref<32x128xf32, #tpu.memory_space<vmem>>, vector<32x128xf32>,
      %cst_27 = arith.constant 0.000000e+00 : f32
      %28 = vector.broadcast %cst_27 : f32 to vector<32x128xf32>
      %c0_28 = arith.constant 0 : index
      %c0_29 = arith.constant 0 : index
      %29 = vector.load %arg6[%c0_28, %c0_29] : memref<32x128xf32, #tpu.memory_space<vmem>>, vector<32x128xf32>
      tpu.vector_store %arg6[%c0_28, %c0_29], %28 {strides = array<i32>} : memref<32x128xf32, #tpu.memory_space<vmem>>, vector<32x128xf32>,
    } else {
    }
    %c0 = arith.constant 0 : index
    %c0_1 = arith.constant 0 : index
    %3 = vector.load %arg2[%c0, %c0_1] : memref<16x128xf32, #tpu.memory_space<vmem>>, vector<8x128xf32>
    %c0_2 = arith.constant 0 : index
    %c0_3 = arith.constant 0 : index
    %4 = vector.load %arg3[%c0_2, %c0_3] : memref<16x128xf32, #tpu.memory_space<vmem>>, vector<8x128xf32>
    %c0_4 = arith.constant 0 : index
    %c0_5 = arith.constant 0 : index
    %5 = vector.load %arg5[%c0_4, %c0_5] : memref<32x128xf32, #tpu.memory_space<vmem>>, vector<8x128xf32>
    %6 = arith.mulf %3, %4 : vector<8x128xf32>
    %7 = arith.addf %5, %6 : vector<8x128xf32>
    %c0_6 = arith.constant 0 : index
    %c0_7 = arith.constant 0 : index
    %8 = vector.load %arg5[%c0_6, %c0_7] : memref<32x128xf32, #tpu.memory_space<vmem>>, vector<8x128xf32>
    tpu.vector_store %arg5[%c0_6, %c0_7], %7 {strides = array<i32>} : memref<32x128xf32, #tpu.memory_space<vmem>>, vector<8x128xf32>,
    %c0_8 = arith.constant 0 : index
    %c0_9 = arith.constant 0 : index
    %9 = vector.load %arg6[%c0_8, %c0_9] : memref<32x128xf32, #tpu.memory_space<vmem>>, vector<8x128xf32>
    %10 = arith.addf %3, %4 : vector<8x128xf32>
    %11 = arith.addf %9, %10 : vector<8x128xf32>
    %c0_10 = arith.constant 0 : index
    %c0_11 = arith.constant 0 : index
    %12 = vector.load %arg6[%c0_10, %c0_11] : memref<32x128xf32, #tpu.memory_space<vmem>>, vector<8x128xf32>
    tpu.vector_store %arg6[%c0_10, %c0_11], %11 {strides = array<i32>} : memref<32x128xf32, #tpu.memory_space<vmem>>, vector<8x128xf32>,
    %c8 = arith.constant 8 : index
    %c0_12 = arith.constant 0 : index
    %13 = vector.load %arg2[%c8, %c0_12] : memref<16x128xf32, #tpu.memory_space<vmem>>, vector<8x128xf32>
    %c8_13 = arith.constant 8 : index
    %c0_14 = arith.constant 0 : index
    %14 = vector.load %arg3[%c8_13, %c0_14] : memref<16x128xf32, #tpu.memory_space<vmem>>, vector<8x128xf32>
    %c8_15 = arith.constant 8 : index
    %c0_16 = arith.constant 0 : index
    %15 = vector.load %arg5[%c8_15, %c0_16] : memref<32x128xf32, #tpu.memory_space<vmem>>, vector<8x128xf32>
    %16 = arith.mulf %13, %14 : vector<8x128xf32>
    %17 = arith.addf %15, %16 : vector<8x128xf32>
    %c8_17 = arith.constant 8 : index
    %c0_18 = arith.constant 0 : index
    %18 = vector.load %arg5[%c8_17, %c0_18] : memref<32x128xf32, #tpu.memory_space<vmem>>, vector<8x128xf32>
    tpu.vector_store %arg5[%c8_17, %c0_18], %17 {strides = array<i32>} : memref<32x128xf32, #tpu.memory_space<vmem>>, vector<8x128xf32>,
    %c8_19 = arith.constant 8 : index
    %c0_20 = arith.constant 0 : index
    %19 = vector.load %arg6[%c8_19, %c0_20] : memref<32x128xf32, #tpu.memory_space<vmem>>, vector<8x128xf32>
    %20 = arith.addf %13, %14 : vector<8x128xf32>
    %21 = arith.addf %19, %20 : vector<8x128xf32>
    %c8_21 = arith.constant 8 : index
    %c0_22 = arith.constant 0 : index
    %22 = vector.load %arg6[%c8_21, %c0_22] : memref<32x128xf32, #tpu.memory_space<vmem>>, vector<8x128xf32>
    tpu.vector_store %arg6[%c8_21, %c0_22], %21 {strides = array<i32>} : memref<32x128xf32, #tpu.memory_space<vmem>>, vector<8x128xf32>,
    %c0_i32_23 = arith.constant 0 : i32
    %23 = arith.cmpi eq, %arg1, %c0_i32_23 : i32
    %24 = arith.extui %23 : i1 to i32
    %c0_i32_24 = arith.constant 0 : i32
    %25 = arith.cmpi ne, %24, %c0_i32_24 : i32
    scf.if %25 {
      %c0_25 = arith.constant 0 : index
      %c0_26 = arith.constant 0 : index
      %26 = vector.load %arg5[%c0_25, %c0_26] : memref<32x128xf32, #tpu.memory_space<vmem>>, vector<32x128xf32>
      %27 = vector.shape_cast %26 : vector<32x128xf32> to vector<1x32x128xf32>
      %cst = arith.constant dense<0.000000e+00> : vector<1xf32>
      %28 = vector.multi_reduction <add>, %27, %cst [1, 2] : vector<1x32x128xf32> to vector<1xf32>
      %29 = vector.shape_cast %28 : vector<1xf32> to vector<1x1x1xf32>
      %30 = vector.extract %29[0, 0, 0] : f32 from vector<1x1x1xf32>
      %c0_27 = arith.constant 0 : index
      %c0_28 = arith.constant 0 : index
      %31 = memref.load %arg4[%c0_27, %c0_28] : memref<1x2xf32, #tpu.memory_space<smem>>
      memref.store %30, %arg4[%c0_27, %c0_28] : memref<1x2xf32, #tpu.memory_space<smem>>
      %c0_29 = arith.constant 0 : index
      %c0_30 = arith.constant 0 : index
      %32 = vector.load %arg6[%c0_29, %c0_30] : memref<32x128xf32, #tpu.memory_space<vmem>>, vector<32x128xf32>
      %33 = vector.shape_cast %32 : vector<32x128xf32> to vector<1x32x128xf32>
      %cst_31 = arith.constant dense<0.000000e+00> : vector<1xf32>
      %34 = vector.multi_reduction <add>, %33, %cst_31 [1, 2] : vector<1x32x128xf32> to vector<1xf32>
      %35 = vector.shape_cast %34 : vector<1xf32> to vector<1x1x1xf32>
      %36 = vector.extract %35[0, 0, 0] : f32 from vector<1x1x1xf32>
      %c0_32 = arith.constant 0 : index
      %c1 = arith.constant 1 : index
      %37 = memref.load %arg4[%c0_32, %c1] : memref<1x2xf32, #tpu.memory_space<smem>>
      memref.store %36, %arg4[%c0_32, %c1] : memref<1x2xf32, #tpu.memory_space<smem>>
    } else {
    }
    return
  }
  func.func @transform_0(%arg0: i32, %arg1: i32) -> (i32, i32) {
    %c1_i32 = arith.constant 1 : i32
    %0 = arith.muli %arg0, %c1_i32 : i32
    %1 = arith.addi %0, %arg1 : i32
    %c0_i32 = arith.constant 0 : i32
    %c0_i32_0 = arith.constant 0 : i32
    return %1, %c0_i32 : i32, i32
  }
  func.func @transform_1(%arg0: i32, %arg1: i32) -> (i32, i32) {
    %c1_i32 = arith.constant 1 : i32
    %0 = arith.muli %arg0, %c1_i32 : i32
    %1 = arith.addi %0, %arg1 : i32
    %c0_i32 = arith.constant 0 : i32
    %c0_i32_0 = arith.constant 0 : i32
    return %1, %c0_i32 : i32, i32
  }
  func.func @transform_2(%arg0: i32, %arg1: i32) -> (i32, i32) {
    %c0_i32 = arith.constant 0 : i32
    %c0_i32_0 = arith.constant 0 : i32
    return %arg0, %c0_i32 : i32, i32
  }
}

</mosaic_0001>

<bundles_post_ra>
// kernel: tpu_custom_call.1
= control target key start
LH: loop header
LB: loop body
LE: loop exit
PB: predicated region body
PF: predicated region fallthrough
CT: control target
= control target key end

     0   :  { %7 = vsyncpa [#allocation5], 0  ;;  %s248_s0 = inlined_call_operand.hbm [shape: f32[16,128], index: 0, kind: input, shape index: {}]   ;;  %s249_s1 = inlined_call_operand.hbm [shape: f32[16,128], index: 1, kind: input, shape index: {}]   ;;  %s250_s2 = inlined_call_operand.hbm [shape: f32[1,2], index: 2, kind: output, shape index: {}]  }
   0x1   :  { %8 = vsyncpa [#allocation8], 0 }
   0x2   :  { %9 = vsyncpa [#allocation6], 0  ;;  %s18_s11 = sshll.u32 %s248_s0, 4  ;;  %s219_s12 = smov [#allocation4]   ;;  %s19_s11 = int_to_ptr.hbm [resolvable:$true] %s18_s11 }
   0x3   :  { %s20_s13 = sshll.u32 %s219_s12, 4  ;;  %s35_s16 = sshll.u32 %s249_s1, 4  ;;  %s21_s13 = int_to_ptr.vmem [resolvable:$true] %s20_s13  ;;  %s36_s16 = int_to_ptr.hbm [resolvable:$true] %s35_s16 }
   0x4   :  { %s220_s17 = smov 128   ;;  %s221_s18 = smov 8  }
   0x5   :  { %26 = dma.hbm_to_vmem [thread:$0]  %s19_s11, 256, %s21_s13, [#allocation5], %s220_s17, %s220_s17, %s221_s18  }
   0x6   :  { %s222_s19 = smov [#allocation7]  }
   0x7   :  { %s37_s20 = sshll.u32 %s222_s19, 4  ;;  %s38_s20 = int_to_ptr.vmem [resolvable:$true] %s37_s20 }
   0x8   :  { %43 = dma.hbm_to_vmem [thread:$0]  %s36_s16, 256, %s38_s20, [#allocation8], %s220_s17, %s220_s17, %s221_s18  }
   0x9   :  { %213 = dma.done.wait [#allocation5], 256  }
   0xa   :  { %214 = vsyncadd [#allocation5], 4294967040 }
   0xb   :  { %215 = dma.done.wait [#allocation8], 256  }
   0xc   :  { %216 = vsyncadd [#allocation8], 4294967040  ;;  %v68_v0 = vld [vmem:[#allocation4] sm:$0xff]  ;;  %v69_v1 = vld [vmem:[#allocation7] sm:$0xff]  ;;  %s132_s22 = sshll.u32 %s250_s2, 4  ;;  %s223_s24 = smov [#allocation9]   ;;  %s133_s22 = int_to_ptr.hbm [resolvable:$true] %s132_s22 }
   0xd   :  { %v78_v2 = vld [vmem:[#allocation4 + $0x8] sm:$0xff]  ;;  %v71_v3 = vmul.f32 %v69_v1, %v68_v0  ;;  %v79_v4 = vld [vmem:[#allocation7 + $0x8] sm:$0xff]  ;;  %v75_v7 = vadd.f32 %v69_v1, %v68_v0 }
   0xe   :  { %v81_v5 = vmul.f32 %v79_v4, %v78_v2  ;;  %v85_v8 = vadd.f32 %v79_v4, %v78_v2 }
  0x10   :  { %v95_v6 = vadd.f32 %v81_v5, %v71_v3  ;;  %v113_v9 = vadd.f32 %v85_v8, %v75_v7 }
  0x12   :  { %98 = vadd.xlane.f32.xlu0 %v95_v6 }
  0x1a   :  { %116 = vadd.xlane.f32.xlu0 %v113_v9 }
  0x85   :  { %v99_v10 = vpop.xlane.xlu0 %98 }
  0x86   :  { %v100_v11 = vrot.slane %v99_v10, 4 }
  0x88   :  { %v101_v12 = vadd.f32 %v100_v11, %v99_v10 }
  0x8a   :  { %v102_v13 = vrot.slane %v101_v12, 2 }
  0x8c   :  { %v103_v14 = vadd.f32 %v102_v13, %v101_v12 }
  0x8d   :  { %v117_v15 = vpop.xlane.xlu0 %116 }
  0x8e   :  { %v118_v16 = vrot.slane %v117_v15, 4  ;;  %v104_v17 = vrot.slane %v103_v14, 1 }
  0x90   :  { %v119_v18 = vadd.f32 %v118_v16, %v117_v15  ;;  %v105_v19 = vadd.f32 %v104_v17, %v103_v14 }
  0x92   :  { %v120_v20 = vrot.slane %v119_v18, 2  ;;  %144 = vpush %v105_v19 }
  0x94   :  { %v121_v21 = vadd.f32 %v120_v20, %v119_v18 }
  0x96   :  { %v122_v22 = vrot.slane %v121_v21, 1 }
  0x98   :  { %v123_v23 = vadd.f32 %v122_v22, %v121_v21 }
  0x9a   :  { %146 = vpush %v123_v23 }
  0xc3   :  { %s145_s0 = spop %144 }
  0xc4   :  { %108 = sst [smem:[#allocation9]] %s145_s0 }
  0xcb   :  { %s147_s23 = spop %146 }
  0xcc   :  { %126 = sst [smem:[#allocation9 + $0x1]] %s147_s23 }
  0xcd   :  { %135 = dma.smem_to_hbm %s223_s24, 16, %s133_s22, [#allocation6]  }
  0xce   :  { %217 = dma.done.wait [#allocation6], 16  }
  0xcf   :  { %218 = vsyncadd [#allocation6], 4294967280 }
  0xd0   :  { %140 = sfence }
  0xd1   :  { %141 = vsyncpa [#allocation5], 1 }
  0xd2   :  { %142 = vsyncpa [#allocation8], 1 }
  0xd3   :  { %143 = vsyncpa [#allocation6], 1 }

</bundles_post_ra>
